<compile_context>
chip_gen: v5e
topology: v5e:2x2
jax: 0.10.0
libtpu: 0.0.40
codegen_flags: <defaults>
</compile_context>

<pallas_src>
import functools

import jax
import jax.numpy as jnp
import numpy as np
from jax.experimental import pallas as pl
from jax.experimental.pallas import tpu as pltpu


def _gaussian_prior_kernel(x_ref, p_ref, z_ref, part_ref, acc_ref, *,
                           d_total, tk, p_rows, params_resident):
    """One (batch-block b, feature-tile k) grid step.

    x_ref    : (nb, tk)            flow input, features-last
    p_ref    : packed params; (4*p_rows padded, Dk) resident buffer if
               params_resident else a (rows, tk) tile
    z_ref    : (nb, tk)            flow output z = x*scale + bias
    part_ref : (nb, 1)  f32        per-row partial log-prob (-0.5 * sum m^2)
    acc_ref  : (nb, 1)  f32        running sum of m^2 across feature tiles
    """
    k = pl.program_id(1)
    last = pl.num_programs(1) - 1

    @pl.when(k == 0)
    def _():
        acc_ref[...] = jnp.zeros_like(acc_ref)

    x = x_ref[...].astype(jnp.float32)                      # (nb, tk)

    if params_resident:
        start = pl.multiple_of(k * tk, 128)
        p = p_ref[:, pl.ds(start, tk)]                      # (rows, tk)
    else:
        p = p_ref[...]                                      # (rows, tk)
    scale = p[0 * p_rows:1 * p_rows, :]
    bias = p[1 * p_rows:2 * p_rows, :]
    mean = p[2 * p_rows:3 * p_rows, :]
    inv_std = p[3 * p_rows:4 * p_rows, :]

    # --- flow forward (ActNorm-style per-feature affine) ---
    z = x * scale + bias
    z_ref[...] = z.astype(z_ref.dtype)

    # --- prior term; per-tile XLU reduce into a tiny (nb, 1) accumulator ---
    m = (z - mean) * inv_std
    contrib = m * m

    if d_total % tk != 0:
        # Remainder masking only on the last feature tile; every other tile
        # takes the plain (cheaper) accumulate path.
        @pl.when(k != last)
        def _():
            acc_ref[...] += jnp.sum(contrib, axis=1, keepdims=True)

        @pl.when(k == last)
        def _():
            lane = (jax.lax.broadcasted_iota(jnp.int32, contrib.shape, 1)
                    + k * tk)
            masked = jnp.where(lane < d_total, contrib, 0.0)
            acc_ref[...] += jnp.sum(masked, axis=1, keepdims=True)
    else:
        acc_ref[...] += jnp.sum(contrib, axis=1, keepdims=True)

    @pl.when(k == last)
    def _():
        part_ref[...] = -0.5 * acc_ref[...]


def gaussian_prior_forward(x_nchw, log_scale_c, bias_c, mean_chw, log_var_chw,
                           *, tk_max=8192, z_dtype=None):
    """Returns (z, log_likelihood) matching GaussianPrior.forward semantics.

    z_dtype lets callers request bf16 z writeback (halves output HBM traffic);
    default keeps the input dtype to preserve the original semantics.
    """
    N, C, H, W = x_nchw.shape
    D = C * H * W
    if z_dtype is None:
        z_dtype = x_nchw.dtype

    # ---- flatten to features-last, precompute per-feature parameters ----
    x2 = x_nchw.reshape(N, D)
    scale_b = jnp.broadcast_to(jnp.exp(log_scale_c)[:, None, None],
                               (C, H, W)).reshape(1, D).astype(jnp.float32)
    bias_b = jnp.broadcast_to(bias_c[:, None, None],
                              (C, H, W)).reshape(1, D).astype(jnp.float32)
    mean_b = mean_chw.reshape(1, D).astype(jnp.float32)
    inv_std_b = jnp.exp(-0.5 * log_var_chw).reshape(1, D).astype(jnp.float32)

    # Parameter-only scalars, added per-sample in the wrapper (no prefetch).
    logdet = jnp.sum(log_scale_c) * float(H * W)
    const = (logdet
             - 0.5 * float(D) * float(np.log(2.0 * np.pi))
             - 0.5 * jnp.sum(log_var_chw)).astype(jnp.float32)

    # ---- small-batch sublane folding: fill all 8 sublanes per vreg row ----
    r = 1
    if N < 8 and 8 % N == 0 and D % (8 // N) == 0:
        r = 8 // N
    rows = N * r
    dr = D // r
    x2 = x2.reshape(rows, dr)

    # Pad batch rows to a multiple of 8 (padded rows are dropped afterwards).
    rows_pad = ((rows + 7) // 8) * 8
    if rows_pad != rows:
        x2 = jnp.pad(x2, ((0, rows_pad - rows), (0, 0)))

    # ---- tile selection ----
    if dr % 128 == 0:
        tk = min(dr, tk_max)
        if dr % tk != 0:
            # Prefer the largest lane-aligned tile that divides dr exactly so
            # the remainder mask never runs.
            t = (tk_max // 128) * 128
            while t >= 1024:
                if dr % t == 0:
                    tk = t
                    break
                t -= 128
    else:
        tk = dr  # full-extent lane block (single feature tile)
    num_k = pl.cdiv(dr, tk)
    dk = num_k * tk

    nb = min(rows_pad, 128)
    if rows_pad >= 16:
        # Keep >= 2 blocks on the "parallel" batch axis (v7x has 2 TCs).
        nb = min(nb, max(8, (rows_pad // 2 // 8) * 8))
    num_b = pl.cdiv(rows_pad, nb)

    # ---- pack per-feature params into one sublane-tile-aligned array ----
    if r == 1:
        pack = jnp.concatenate([scale_b, bias_b, mean_b, inv_std_b], axis=0)
        pack = jnp.concatenate([pack, jnp.zeros((4, D), jnp.float32)], axis=0)
        p_rows = 1                       # each param is one broadcast row
    else:
        def _fold(a):                    # (1, D) -> (rows, dr); row g uses
            return jnp.tile(a.reshape(r, dr), (N, 1))  # feature chunk g % r
        pack = jnp.concatenate([_fold(scale_b), _fold(bias_b),
                                _fold(mean_b), _fold(inv_std_b)], axis=0)
        p_rows = rows                    # == nb == 8 in the folded case
    p_total_rows = pack.shape[0]
    if dk != dr:
        pack = jnp.pad(pack, ((0, 0), (0, dk - dr)))

    params_resident = (num_k > 1) and (p_total_rows * dk * 4 <= (2 << 20))
    if params_resident:
        p_spec = pl.BlockSpec((p_total_rows, dk), lambda b, k: (0, 0))
        p_buf_bytes = 2 * p_total_rows * dk * 4
    else:
        p_spec = pl.BlockSpec((p_total_rows, tk), lambda b, k: (0, k))
        p_buf_bytes = 2 * p_total_rows * tk * 4

    # ---- VMEM budget from the real double-buffered footprint ----
    x_item = jnp.dtype(x2.dtype).itemsize
    z_item = jnp.dtype(z_dtype).itemsize
    footprint = (2 * nb * tk * x_item        # x, double buffered
                 + 2 * nb * tk * z_item      # z, double buffered
                 + p_buf_bytes               # packed params
                 + nb * 4                    # accumulator scratch
                 + 2 * nb * 4)               # per-row partial output
    vmem_limit = int(min(max(int(footprint * 1.5) + (1 << 20), 8 << 20),
                         32 << 20))          # well inside v7x's 64 MiB

    kernel = functools.partial(_gaussian_prior_kernel, d_total=dr, tk=tk,
                               p_rows=p_rows, params_resident=params_resident)

    z_flat, part = pl.pallas_call(
        kernel,
        out_shape=(jax.ShapeDtypeStruct((rows_pad, dr), z_dtype),
                   jax.ShapeDtypeStruct((rows_pad, 1), jnp.float32)),
        grid_spec=pltpu.PrefetchScalarGridSpec(
            num_scalar_prefetch=0,
            grid=(num_b, num_k),
            in_specs=[pl.BlockSpec((nb, tk), lambda b, k: (b, k)),
                      p_spec],
            out_specs=[pl.BlockSpec((nb, tk), lambda b, k: (b, k)),
                       pl.BlockSpec((nb, 1), lambda b, k: (b, 0))],
            scratch_shapes=[pltpu.VMEM((nb, 1), jnp.float32)]),
        compiler_params=pltpu.CompilerParams(
            dimension_semantics=("parallel", "arbitrary"),
            vmem_limit_bytes=vmem_limit),
    )(x2, pack)

    z = z_flat[:rows].reshape(N, C, H, W)
    ll = part[:rows, 0].reshape(N, r).sum(axis=1) + const
    return z, ll


def _reference_forward(x_nchw, log_scale_c, bias_c, mean_chw, log_var_chw):
    N, C, H, W = x_nchw.shape
    D = C * H * W
    z = (x_nchw * jnp.exp(log_scale_c)[None, :, None, None]
         + bias_c[None, :, None, None])
    logdet = jnp.sum(jnp.broadcast_to(log_scale_c[:, None, None], (C, H, W)))
    m = (z - mean_chw[None]) * jnp.sqrt(jnp.exp(-log_var_chw[None]))
    logp = (-0.5 * jnp.sum(m.reshape(N, -1) ** 2, axis=1)
            - 0.5 * D * np.log(2.0 * np.pi)
            - 0.5 * jnp.sum(log_var_chw))
    return z, logp + logdet


if __name__ == "__main__":
    key = jax.random.PRNGKey(0)
    N, C, H, W = 2, 4, 16, 16

    kx, _ = jax.random.split(key)
    x = jax.random.normal(kx, (N, C, H, W), dtype=jnp.float32)

    # Deterministic parameters.
    # Flow (ActNorm-style) params, per channel:
    log_scale_c = 0.05 * jnp.arange(C, dtype=jnp.float32) - 0.1
    bias_c = 0.01 * jnp.arange(C, dtype=jnp.float32)
    # Prior params after _initialize: zeros shaped like z[0] = (C, H, W).
    mean_chw = jnp.zeros((C, H, W), dtype=jnp.float32)
    log_var_chw = jnp.zeros((C, H, W), dtype=jnp.float32)
    # TODO(synk): reverse()/sample() (temperature-scaled Gaussian sampling) is
    # not part of forward and is left unimplemented.

    z, ll = gaussian_prior_forward(x, log_scale_c, bias_c, mean_chw,
                                   log_var_chw)
    z = jax.block_until_ready(z)
    ll = jax.block_until_ready(ll)

    z_ref, ll_ref = _reference_forward(x, log_scale_c, bias_c, mean_chw,
                                       log_var_chw)
    np.testing.assert_allclose(np.asarray(z), np.asarray(z_ref),
                               rtol=1e-5, atol=1e-5)
    np.testing.assert_allclose(np.asarray(ll), np.asarray(ll_ref),
                               rtol=1e-4, atol=1e-3)

    print("KERNEL_OK")
</pallas_src>

<mosaic_0001>
module attributes {stable_mosaic.version = 11 : i64} {
  func.func @_gaussian_prior_kernel(%arg0: i32, %arg1: i32, %arg2: memref<8x256xf32, #tpu.memory_space<vmem>>, %arg3: memref<32x256xf32, #tpu.memory_space<vmem>>, %arg4: memref<8x256xf32, #tpu.memory_space<vmem>>, %arg5: memref<8x1xf32, #tpu.memory_space<vmem>>, %arg6: memref<8x1xf32, #tpu.memory_space<vmem>>) attributes {dimension_semantics = [#tpu.dimension_semantics<parallel>, #tpu.dimension_semantics<arbitrary>], iteration_bounds = array<i64: 1, 1>, scalar_prefetch = 0 : i64, scratch_operands = 1 : i64, tpu.core_type = #tpu.core_type<tc>, window_params = [{transform_indices = @transform_0, window_bounds = array<i64: 8, 256>}, {transform_indices = @transform_1, window_bounds = array<i64: 32, 256>}, {transform_indices = @transform_2, window_bounds = array<i64: 8, 256>}, {transform_indices = @transform_3, window_bounds = array<i64: 8, 1>}]} {
    %c0_i32 = arith.constant 0 : i32
    %0 = arith.cmpi eq, %arg1, %c0_i32 : i32
    %1 = arith.extui %0 : i1 to i32
    %c0_i32_0 = arith.constant 0 : i32
    %2 = arith.cmpi ne, %1, %c0_i32_0 : i32
    scf.if %2 {
      %cst_12 = arith.constant 0.000000e+00 : f32
      %23 = vector.broadcast %cst_12 : f32 to vector<8x1xf32>
      %c0_13 = arith.constant 0 : index
      %c0_14 = arith.constant 0 : index
      %24 = vector.load %arg6[%c0_13, %c0_14] : memref<8x1xf32, #tpu.memory_space<vmem>>, vector<8x1xf32>
      tpu.vector_store %arg6[%c0_13, %c0_14], %23 {strides = array<i32>} : memref<8x1xf32, #tpu.memory_space<vmem>>, vector<8x1xf32>,
    } else {
    }
    %c0 = arith.constant 0 : index
    %c0_1 = arith.constant 0 : index
    %3 = vector.load %arg2[%c0, %c0_1] : memref<8x256xf32, #tpu.memory_space<vmem>>, vector<8x256xf32>
    %c0_2 = arith.constant 0 : index
    %c0_3 = arith.constant 0 : index
    %4 = vector.load %arg3[%c0_2, %c0_3] : memref<32x256xf32, #tpu.memory_space<vmem>>, vector<32x256xf32>
    %5 = vector.extract_strided_slice %4 {offsets = [0, 0], sizes = [8, 256], strides = [1, 1]} : vector<32x256xf32> to vector<8x256xf32>
    %6 = vector.extract_strided_slice %4 {offsets = [8, 0], sizes = [8, 256], strides = [1, 1]} : vector<32x256xf32> to vector<8x256xf32>
    %7 = vector.extract_strided_slice %4 {offsets = [16, 0], sizes = [8, 256], strides = [1, 1]} : vector<32x256xf32> to vector<8x256xf32>
    %8 = vector.extract_strided_slice %4 {offsets = [24, 0], sizes = [8, 256], strides = [1, 1]} : vector<32x256xf32> to vector<8x256xf32>
    %9 = arith.mulf %3, %5 : vector<8x256xf32>
    %10 = arith.addf %9, %6 : vector<8x256xf32>
    %c0_4 = arith.constant 0 : index
    %c0_5 = arith.constant 0 : index
    %11 = vector.load %arg4[%c0_4, %c0_5] : memref<8x256xf32, #tpu.memory_space<vmem>>, vector<8x256xf32>
    tpu.vector_store %arg4[%c0_4, %c0_5], %10 {strides = array<i32>} : memref<8x256xf32, #tpu.memory_space<vmem>>, vector<8x256xf32>,
    %12 = arith.subf %10, %7 : vector<8x256xf32>
    %13 = arith.mulf %12, %8 : vector<8x256xf32>
    %14 = arith.mulf %13, %13 : vector<8x256xf32>
    %c0_6 = arith.constant 0 : index
    %c0_7 = arith.constant 0 : index
    %15 = vector.load %arg6[%c0_6, %c0_7] : memref<8x1xf32, #tpu.memory_space<vmem>>, vector<8x1xf32>
    %cst = arith.constant dense<0.000000e+00> : vector<8xf32>
    %16 = vector.multi_reduction <add>, %14, %cst [1] : vector<8x256xf32> to vector<8xf32>
    %17 = vector.shape_cast %16 : vector<8xf32> to vector<8x1xf32>
    %18 = arith.addf %15, %17 : vector<8x1xf32>
    %c0_8 = arith.constant 0 : index
    %c0_9 = arith.constant 0 : index
    %19 = vector.load %arg6[%c0_8, %c0_9] : memref<8x1xf32, #tpu.memory_space<vmem>>, vector<8x1xf32>
    tpu.vector_store %arg6[%c0_8, %c0_9], %18 {strides = array<i32>} : memref<8x1xf32, #tpu.memory_space<vmem>>, vector<8x1xf32>,
    %c0_i32_10 = arith.constant 0 : i32
    %20 = arith.cmpi eq, %arg1, %c0_i32_10 : i32
    %21 = arith.extui %20 : i1 to i32
    %c0_i32_11 = arith.constant 0 : i32
    %22 = arith.cmpi ne, %21, %c0_i32_11 : i32
    scf.if %22 {
      %c0_12 = arith.constant 0 : index
      %c0_13 = arith.constant 0 : index
      %23 = vector.load %arg6[%c0_12, %c0_13] : memref<8x1xf32, #tpu.memory_space<vmem>>, vector<8x1xf32>
      %cst_14 = arith.constant -5.000000e-01 : f32
      %24 = vector.broadcast %cst_14 : f32 to vector<8x1xf32>
      %25 = arith.mulf %24, %23 : vector<8x1xf32>
      %c0_15 = arith.constant 0 : index
      %c0_16 = arith.constant 0 : index
      %26 = vector.load %arg5[%c0_15, %c0_16] : memref<8x1xf32, #tpu.memory_space<vmem>>, vector<8x1xf32>
      tpu.vector_store %arg5[%c0_15, %c0_16], %25 {strides = array<i32>} : memref<8x1xf32, #tpu.memory_space<vmem>>, vector<8x1xf32>,
    } else {
    }
    return
  }
  func.func @transform_0(%arg0: i32, %arg1: i32) -> (i32, i32) {
    %c0_i32 = arith.constant 0 : i32
    return %arg0, %arg1 : i32, i32
  }
  func.func @transform_1(%arg0: i32, %arg1: i32) -> (i32, i32) {
    %c0_i32 = arith.constant 0 : i32
    %c0_i32_0 = arith.constant 0 : i32
    return %c0_i32, %arg1 : i32, i32
  }
  func.func @transform_2(%arg0: i32, %arg1: i32) -> (i32, i32) {
    %c0_i32 = arith.constant 0 : i32
    return %arg0, %arg1 : i32, i32
  }
  func.func @transform_3(%arg0: i32, %arg1: i32) -> (i32, i32) {
    %c0_i32 = arith.constant 0 : i32
    %c0_i32_0 = arith.constant 0 : i32
    return %arg0, %c0_i32 : i32, i32
  }
}

</mosaic_0001>

<bundles_post_ra>
// kernel: tpu_custom_call.1
= control target key start
LH: loop header
LB: loop body
LE: loop exit
PB: predicated region body
PF: predicated region fallthrough
CT: control target
= control target key end

     0   :  { %9 = vsyncpa [#allocation4], 0  ;;  %s232_s0 = inlined_call_operand.hbm [shape: f32[8,256], index: 0, kind: input, shape index: {}]   ;;  %s233_s1 = inlined_call_operand.hbm [shape: f32[32,256], index: 1, kind: input, shape index: {}]   ;;  %s234_s2 = inlined_call_operand.hbm [shape: f32[8,256], index: 2, kind: output, shape index: {0}]   ;;  %s235_s3 = inlined_call_operand.vmem [shape: f32[8,1], index: 3, kind: output, shape index: {1}]  }
   0x1   :  { %10 = vsyncpa [#allocation7], 0 }
   0x2   :  { %11 = vsyncpa [#allocation5], 0  ;;  %s17_s14 = sshll.u32 %s232_s0, 4  ;;  %s191_s15 = smov [#allocation3]   ;;  %s18_s14 = int_to_ptr.hbm [resolvable:$true] %s17_s14 }
   0x3   :  { %s19_s16 = sshll.u32 %s191_s15, 4  ;;  %s27_s19 = sshll.u32 %s233_s1, 4  ;;  %s20_s16 = int_to_ptr.vmem [resolvable:$true] %s19_s16  ;;  %s28_s19 = int_to_ptr.hbm [resolvable:$true] %s27_s19 }
   0x4   :  { %22 = dma.hbm_to_vmem [thread:$0]  %s18_s14, 256, %s20_s16, [#allocation4]  }
   0x5   :  { %s192_s20 = smov [#allocation6]   ;;  %s193_s22 = smov 256  }
   0x6   :  { %s29_s21 = sshll.u32 %s192_s20, 4  ;;  %s194_s23 = smov 16   ;;  %s30_s21 = int_to_ptr.vmem [resolvable:$true] %s29_s21 }
   0x7   :  { %35 = dma.hbm_to_vmem [thread:$0]  %s28_s19, 1024, %s30_s21, [#allocation7], %s193_s22, %s193_s22, %s194_s23  }
   0x8   :  { %185 = dma.done.wait [#allocation4], 256  }
   0x9   :  { %186 = vsyncadd [#allocation4], 4294967040 }
   0xa   :  { %187 = dma.done.wait [#allocation7], 1024  }
   0xb   :  { %188 = vsyncadd [#allocation7], 4294966272  ;;  %vm48_vm0 = vcmask 7168   ;;  %v195_v0 = vmov 0.0   ;;  %v50_v1 = vld [vmem:[#allocation3] sm:$0xff]  ;;  %v51_v2 = vld [vmem:[#allocation3 + $0x8] sm:$0xff] }
   0xc   :  { %49 = vst.msk [vmem:[#allocation2] sm:$0xff] %vm48_vm0, %v195_v0  ;;  %v52_v3 = vld [vmem:[#allocation6] sm:$0xff]  ;;  %v53_v4 = vld [vmem:[#allocation6 + $0x8] sm:$0xff]  ;;  %v54_v5 = vld [vmem:[#allocation6 + $0x10] sm:$0xff]  ;;  %s196_s0 = smov [#allocation8]   ;;  %s92_s26 = sshll.u32 %s234_s2, 4  ;;  %s93_s26 = int_to_ptr.hbm [resolvable:$true] %s92_s26 }
   0xd   :  { %v55_v6 = vld [vmem:[#allocation6 + $0x18] sm:$0xff]  ;;  %v60_v7 = vmul.f32 %v52_v3, %v50_v1  ;;  %v56_v8 = vld [vmem:[#allocation6 + $0x20] sm:$0xff]  ;;  %v61_v9 = vmul.f32 %v53_v4, %v51_v2  ;;  %v57_v10 = vld [vmem:[#allocation6 + $0x28] sm:$0xff]  ;;  %s90_s1 = sshll.u32 %s196_s0, 4  ;;  %s91_s1 = int_to_ptr.vmem [resolvable:$true] %s90_s1 }
   0xe   :  { %v58_v12 = vld [vmem:[#allocation6 + $0x30] sm:$0xff]  ;;  %v59_v14 = vld [vmem:[#allocation6 + $0x38] sm:$0xff] }
   0xf   :  { %v62_v11 = vadd.f32 %v60_v7, %v54_v5  ;;  %v63_v13 = vadd.f32 %v61_v9, %v55_v6 }
  0x11   :  { %v66_v15 = vsub.f32 %v62_v11, %v56_v8  ;;  %64 = vst [vmem:[#allocation8] sm:$0xff] %v62_v11  ;;  %v67_v16 = vsub.f32 %v63_v13, %v57_v10 }
  0x12   :  { %65 = vst [vmem:[#allocation8 + $0x8] sm:$0xff] %v63_v13 }
  0x13   :  { %v68_v17 = vmul.f32 %v66_v15, %v58_v12  ;;  %v69_v18 = vmul.f32 %v67_v16, %v59_v14  ;;  %95 = dma.vmem_to_hbm [thread:$0]  %s91_s1, 256, %s93_s26, [#allocation5]   ;;  %v72_v22 = vld [vmem:[#allocation2] sm:$0xff] }
  0x15   :  { %v70_v19 = vmul.f32 %v68_v17, %v68_v17  ;;  %v71_v20 = vmul.f32 %v69_v18, %v69_v18 }
  0x17   :  { %v73_v21 = vadd.f32 %v71_v20, %v70_v19 }
  0x19   :  { %74 = vadd.xlane.f32.xlu0 %v73_v21 }
  0x8c   :  { %v75_v23 = vpop.xlane.xlu0 %74 }
  0x8d   :  { %v76_v24 = vadd.f32 %v75_v23, %v72_v22 }
  0x8f   :  { %78 = vst.msk [vmem:[#allocation2] sm:$0xff] %vm48_vm0, %v76_v24 }
  0x96   :  { %v82_v25 = vld [vmem:[#allocation2] sm:$0xff] }
  0x97   :  { %v83_v26 = vmul.f32 -0.5, %v82_v25 }
  0x99   :  { %84 = vst.msk [vmem:[%s235_s3] sm:$0xff] %vm48_vm0, %v83_v26 }
  0x9a   :  { %189 = dma.done.wait [#allocation5], 256  }
  0x9b   :  { %190 = vsyncadd [#allocation5], 4294967040 }
  0x9c   :  { %104 = vsyncpa [#allocation4], 1 }
  0x9d   :  { %105 = vsyncpa [#allocation7], 1 }
  0x9e   :  { %106 = vsyncpa [#allocation5], 1 }

</bundles_post_ra>
